<compile_context>
chip_gen: v7x
topology: tpu7x:2x2x1
jax: 0.10.0
libtpu: 0.0.40
codegen_flags: <defaults>
</compile_context>

<pallas_src>
import functools
import math

import jax
import jax.numpy as jnp
from jax.experimental import pallas as pl
from jax.experimental.pallas import tpu as pltpu


def _round_up(n, m):
    return ((n + m - 1) // m) * m


def _layernorm_kernel(*refs, eps, inv_feat, affine):
    if affine:
        x_ref, gb_ref, o_ref = refs
    else:
        x_ref, o_ref = refs
        gb_ref = None

    x = x_ref[...].astype(jnp.float32)
    # Two-pass statistics on the resident tile: mean, then biased variance
    # of the centered values (matches torch.var(unbiased=False)).
    mean = jnp.sum(x, axis=-1, keepdims=True) * inv_feat
    xc = x - mean
    var = jnp.sum(xc * xc, axis=-1, keepdims=True) * inv_feat
    y = xc * jax.lax.rsqrt(var + eps)
    if affine:
        gb = gb_ref[...]                       # (2, F) f32, VMEM-resident
        y = y * gb[0:1, :] + gb[1:2, :]
    o_ref[...] = y.astype(o_ref.dtype)


def _vmem_capacity_bytes():
    try:
        return int(pltpu.get_tpu_info().vmem_capacity_bytes)
    except Exception:
        return 64 * 1024 * 1024                # conservative (v7x per-TC VMEM)


def _num_tensorcores_per_chip():
    # v7x has 2 TensorCores per chip; v5e/v6e have 1.  Best-effort detection.
    try:
        kind = jax.devices()[0].device_kind.lower()
        if "v7" in kind:
            return 2
    except Exception:
        pass
    return 1


def _pick_row_tile(rows, feat, itemsize, cap, num_cores):
    # Sublane packing: 8 rows/vreg for f32, 16 for bf16, 32 for int8/fp8.
    sublane = max(8, 32 // max(1, itemsize))

    # VMEM per tile-row:
    #   double-buffered in + out blocks : 2 * 2 * feat * itemsize
    #   in-kernel f32 temporaries (upcast x + centered/normalized y): ~2*4*feat
    bytes_per_row = feat * (4 * itemsize + 8)
    block_budget = max(2 * 1024 * 1024, min(cap // 4, 32 * 1024 * 1024))
    budget_rows = max(sublane, block_budget // bytes_per_row)

    # Past ~2-4 MiB of input block the HBM roofline is flat; no need to go
    # bigger than that (but never below one sublane granule).
    target_rows = max(sublane, (4 * 1024 * 1024) // (feat * itemsize))

    row_tile = min(budget_rows, target_rows)

    # Keep enough grid steps for megacore sharding (v7x) / pipeline overlap.
    min_steps = 8 if num_cores >= 2 else 4
    row_tile = min(row_tile,
                   max(sublane, _round_up(pl.cdiv(rows, min_steps), sublane)))

    # Never bigger than the (sublane-rounded) problem itself.
    row_tile = min(row_tile, _round_up(rows, sublane))
    row_tile = max(sublane, (row_tile // sublane) * sublane)
    return row_tile


def layer_norm_pallas(x, normalized_shape, gamma=None, beta=None,
                      eps=1e-5, elementwise_affine=True):
    if isinstance(normalized_shape, int):
        normalized_shape = (normalized_shape,)
    normalized_shape = tuple(int(d) for d in normalized_shape)
    ndim_norm = len(normalized_shape)
    assert tuple(x.shape[-ndim_norm:]) == normalized_shape, \
        "trailing dims of x must match normalized_shape"

    feat = math.prod(normalized_shape)
    lead_shape = x.shape[:-ndim_norm]
    rows = math.prod(lead_shape) if lead_shape else 1

    dtype = x.dtype
    itemsize = jnp.dtype(dtype).itemsize

    # Row-major flatten: a free reshape, no HBM copy.  No padding anywhere.
    # TODO(synk): a single row must fit VMEM; huge normalized_shape would need
    # a multi-pass feature-dim reduction which is not implemented here.
    x2 = x.reshape(rows, feat)

    cap = _vmem_capacity_bytes()
    num_cores = _num_tensorcores_per_chip()
    row_tile = _pick_row_tile(rows, feat, itemsize, cap, num_cores)
    grid = (pl.cdiv(rows, row_tile),)

    x_spec = pl.BlockSpec((row_tile, feat), lambda i: (i, 0))
    out_spec = pl.BlockSpec((row_tile, feat), lambda i: (i, 0))

    kernel = functools.partial(_layernorm_kernel, eps=float(eps),
                               inv_feat=1.0 / float(feat),
                               affine=bool(elementwise_affine))

    if elementwise_affine:
        if gamma is None:
            gamma = jnp.ones(normalized_shape, dtype)
        if beta is None:
            beta = jnp.zeros(normalized_shape, dtype)
        # Single resident f32 (2, F) operand (constant index_map): one DMA
        # stream, no per-step upcasts in the kernel.
        gb = jnp.stack([jnp.asarray(gamma).reshape(feat),
                        jnp.asarray(beta).reshape(feat)]).astype(jnp.float32)
        in_specs = [x_spec, pl.BlockSpec((2, feat), lambda i: (0, 0))]
        operands = (x2, gb)
    else:
        in_specs = [x_spec]
        operands = (x2,)

    vmem_limit = min(cap * 3 // 4, 100 * 1024 * 1024)

    out2 = pl.pallas_call(
        kernel,
        out_shape=jax.ShapeDtypeStruct((rows, feat), dtype),
        grid_spec=pltpu.PrefetchScalarGridSpec(
            num_scalar_prefetch=0,
            grid=grid,
            in_specs=in_specs,
            out_specs=out_spec,
        ),
        compiler_params=pltpu.CompilerParams(
            dimension_semantics=("parallel",),
            vmem_limit_bytes=vmem_limit),
    )(*operands)

    return out2.reshape(x.shape)


if __name__ == "__main__":
    key = jax.random.PRNGKey(0)
    batch, seq, hidden = 2, 8, 32          # normalized_shape = (hidden,)
    x = jax.random.normal(key, (batch, seq, hidden), dtype=jnp.float32)

    # deterministic non-trivial params (any learned values are valid)
    gamma = 1.0 + 0.01 * jnp.arange(hidden, dtype=jnp.float32)
    beta = 0.1 * jnp.arange(hidden, dtype=jnp.float32)

    out = layer_norm_pallas(x, hidden, gamma, beta, eps=1e-5,
                            elementwise_affine=True)
    out = jax.block_until_ready(out)

    # reference (matches torch forward: biased var, eps inside sqrt)
    mean = jnp.mean(x, axis=-1, keepdims=True)
    var = jnp.mean((x - mean) ** 2, axis=-1, keepdims=True)
    ref = (x - mean) / jnp.sqrt(var + 1e-5) * gamma + beta
    assert jnp.allclose(out, ref, atol=2e-5, rtol=1e-5), "affine mismatch vs reference"

    # non-affine path (no gamma/beta operands at all)
    out_na = layer_norm_pallas(x, hidden, eps=1e-5, elementwise_affine=False)
    out_na = jax.block_until_ready(out_na)
    ref_na = (x - mean) / jnp.sqrt(var + 1e-5)
    assert jnp.allclose(out_na, ref_na, atol=2e-5, rtol=1e-5), "non-affine mismatch"

    print("KERNEL_OK")
</pallas_src>

<mosaic_0001>
module attributes {stable_mosaic.version = 11 : i64} {
  func.func @_layernorm_kernel(%arg0: i32, %arg1: memref<8x32xf32, #tpu.memory_space<vmem>>, %arg2: memref<2x32xf32, #tpu.memory_space<vmem>>, %arg3: memref<8x32xf32, #tpu.memory_space<vmem>>) attributes {dimension_semantics = [#tpu.dimension_semantics<parallel>], iteration_bounds = array<i64: 2>, scalar_prefetch = 0 : i64, scratch_operands = 0 : i64, tpu.core_type = #tpu.core_type<tc>, window_params = [{transform_indices = @transform_0, window_bounds = array<i64: 8, 32>}, {pipeline_mode = #tpu.pipeline_mode<synchronous>, transform_indices = @transform_1, window_bounds = array<i64: 2, 32>}, {transform_indices = @transform_2, window_bounds = array<i64: 8, 32>}]} {
    %c0 = arith.constant 0 : index
    %c0_0 = arith.constant 0 : index
    %0 = vector.load %arg1[%c0, %c0_0] : memref<8x32xf32, #tpu.memory_space<vmem>>, vector<8x32xf32>
    %cst = arith.constant dense<0.000000e+00> : vector<8xf32>
    %1 = vector.multi_reduction <add>, %0, %cst [1] : vector<8x32xf32> to vector<8xf32>
    %2 = vector.shape_cast %1 : vector<8xf32> to vector<8x1xf32>
    %cst_1 = arith.constant 3.125000e-02 : f32
    %3 = vector.broadcast %cst_1 : f32 to vector<8x1xf32>
    %4 = arith.mulf %2, %3 : vector<8x1xf32>
    %5 = vector.broadcast %4 : vector<8x1xf32> to vector<8x32xf32>
    %6 = arith.subf %0, %5 : vector<8x32xf32>
    %7 = arith.mulf %6, %6 : vector<8x32xf32>
    %cst_2 = arith.constant dense<0.000000e+00> : vector<8xf32>
    %8 = vector.multi_reduction <add>, %7, %cst_2 [1] : vector<8x32xf32> to vector<8xf32>
    %9 = vector.shape_cast %8 : vector<8xf32> to vector<8x1xf32>
    %cst_3 = arith.constant 3.125000e-02 : f32
    %10 = vector.broadcast %cst_3 : f32 to vector<8x1xf32>
    %11 = arith.mulf %9, %10 : vector<8x1xf32>
    %cst_4 = arith.constant 9.99999974E-6 : f32
    %12 = vector.broadcast %cst_4 : f32 to vector<8x1xf32>
    %13 = arith.addf %11, %12 : vector<8x1xf32>
    %14 = math.rsqrt %13 : vector<8x1xf32>
    %15 = vector.broadcast %14 : vector<8x1xf32> to vector<8x32xf32>
    %16 = arith.mulf %6, %15 : vector<8x32xf32>
    %c0_5 = arith.constant 0 : index
    %c0_6 = arith.constant 0 : index
    %17 = vector.load %arg2[%c0_5, %c0_6] : memref<2x32xf32, #tpu.memory_space<vmem>>, vector<2x32xf32>
    %18 = vector.extract_strided_slice %17 {offsets = [0, 0], sizes = [1, 32], strides = [1, 1]} : vector<2x32xf32> to vector<1x32xf32>
    %19 = vector.broadcast %18 : vector<1x32xf32> to vector<8x32xf32>
    %20 = arith.mulf %16, %19 : vector<8x32xf32>
    %21 = vector.extract_strided_slice %17 {offsets = [1, 0], sizes = [1, 32], strides = [1, 1]} : vector<2x32xf32> to vector<1x32xf32>
    %22 = vector.broadcast %21 : vector<1x32xf32> to vector<8x32xf32>
    %23 = arith.addf %20, %22 : vector<8x32xf32>
    %c0_7 = arith.constant 0 : index
    %c0_8 = arith.constant 0 : index
    %24 = vector.load %arg3[%c0_7, %c0_8] : memref<8x32xf32, #tpu.memory_space<vmem>>, vector<8x32xf32>
    tpu.vector_store %arg3[%c0_7, %c0_8], %23 {strides = array<i32>} : memref<8x32xf32, #tpu.memory_space<vmem>>, vector<8x32xf32>,
    return
  }
  func.func @transform_0(%arg0: i32) -> (i32, i32) {
    %c0_i32 = arith.constant 0 : i32
    %c0_i32_0 = arith.constant 0 : i32
    return %arg0, %c0_i32 : i32, i32
  }
  func.func @transform_1(%arg0: i32) -> (i32, i32) {
    %c0_i32 = arith.constant 0 : i32
    %c0_i32_0 = arith.constant 0 : i32
    %c0_i32_1 = arith.constant 0 : i32
    return %c0_i32, %c0_i32_0 : i32, i32
  }
  func.func @transform_2(%arg0: i32) -> (i32, i32) {
    %c0_i32 = arith.constant 0 : i32
    %c0_i32_0 = arith.constant 0 : i32
    return %arg0, %c0_i32 : i32, i32
  }
}

</mosaic_0001>

<bundles_post_ra>
// kernel: tpu_custom_call.1
= control target key start
LH: loop header
LB: loop body
LE: loop exit
PB: predicated region body
PF: predicated region fallthrough
CT: control target
= control target key end

     0   :  { %7 = vsyncpa [#allocation3], 0  ;;  %s612_s0 = inlined_call_operand.hbm [shape: f32[16,32], index: 0, kind: input, shape index: {}]   ;;  %s613_s1 = inlined_call_operand.vmem [shape: f32[2,32], index: 1, kind: input, shape index: {}]   ;;  %s614_s2 = inlined_call_operand.hbm [shape: f32[16,32], index: 2, kind: output, shape index: {}]  }
   0x1   :  { %9 = vsyncpa [#allocation3 + $0x1], 0 }
   0x2   :  { %10 = vsyncpa [#allocation4], 0 }
   0x3   :  { %12 = vsyncpa [#allocation4 + $0x1], 0  ;;  %s445_s9 = smov 0   ;;  %s447_s10 = smov 0  }
   0x4   :  { %s449_s11 = smov 0   ;;  %s451_s12 = smov 0  }
   0x5 LB: > { %s466_s13 = sadd.s32 4294967295, %s426_s12   ;;  %s270_s14 = sadd.s32 4294967294, %s426_s12   ;;  %s426_s12 = sphi %s451_s12, %s629_s12   ;;  %s422_s11 = sphi %s449_s11, %s628_s11   ;;  %s418_s10 = sphi %s447_s10, %s627_s10   ;;  %s414_s9 = sphi %s445_s9, %s626_s9  }
   0x6   : > { %s470_s15 = sadd.s32 1, %s426_s12   ;;  %s25_s16 = sadd.s32 1, %s422_s11 }
   0x7   : > { %s22_s17 = ssub.s32 %s426_s12, %s470_s15  ;;  %p32_p0 = scmp.ne.s32.totalorder %s422_s11, %s418_s10 }
   0x8   : > { %p23_p1 = scmp.eq.s32.totalorder %s22_s17, 0  ;;  %p33_p2 = scmp.eq.s32.totalorder %s426_s12, 0 }
   0x9   : > { %p38_p3 = scmp.ne.s32.totalorder %s418_s10, %s414_s9  ;;  %p39_p4 = scmp.eq.s32.totalorder %s466_s13, 0 }
   0xa   : > { %s482_s18 = scalar_select %p23_p1, %s422_s11, %s25_s16  }
   0xb   : > { %p484_p5 = por %p33_p2, %p32_p0  ;;  %p488_p6 = por %p39_p4, %p38_p3 }
   0xc   : > { %p83_p7 = scmp.eq.s32.totalorder %s466_s13, 1  ;;  %p89_p8 = scmp.eq.s32.totalorder %s270_s14, 1 }
   0xd   : > { %p294_p10 = scmp.lt.s32.totalorder %s426_s12, 2  ;;  %s112_s23 = sand.u32 1, %s422_s11  }
   0xe   : > { %p495_p11 = por %p83_p7, %p32_p0  ;;  %p499_p12 = por %p89_p8, %p38_p3 }
   0xf   : > { %s274_s24 = sshll.u32 %s426_s12, 7  ;;  %s273_s25 = sshll.u32 %s112_s23, 3 }
  0x10   : > { %s618_s21 = scalar_select %p495_p11, 1, 0 }
  0x11   : > { %s619_s22 = scalar_select %p499_p12, 1, 0 }
  0x12   : > { %s508_s28 = scalar_lea.hbm %s612_s0, %s274_s24  ;;  %s116_s29 = scalar_lea.vmem [#allocation2], %s273_s25 }
  0x13   : > { %s123_s30 = sshll.u32 %s116_s29, 4  ;;  %p512_p13 = pnand %p294_p10, %p484_p5  ;;  %s516_s30 = int_to_ptr.vmem [resolvable:$true] %s123_s30 }
  0x14   : > { %s113_s4 = scalar_lea.sflag [#allocation3], %s112_s23  ;;  %s330_s5 = scalar_lea.hbm %s508_s28, 128 }
  0x15   : > { %p331_p2 = scmp.ne.s32.totalorder %s508_s28, %s330_s5  ;;  %p332_p3 = pneg %p512_p13 }
  0x16   : > { %s335_s8 = scalar_lea.hbm %s612_s0, 256  ;;  %p336_p5 = scmp.lt.u32.totalorder %s508_s28, %s612_s0 }
  0x17   : > { %p333_p4 = pnand %p332_p3, %p331_p2  ;;  %p337_p8 = scmp.lt.u32.totalorder %s335_s8, %s330_s5 }
  0x18   : > { %p339_p9 = scmp.lt.u32.totalorder %s330_s5, %s508_s28 }
  0x19   : > { %p334_p7 = pneg %p333_p4  ;;  %p338_p10 = por %p337_p8, %p336_p5 }
  0x1b   : > { %p340_p0 = por %p339_p9, %p338_p10 }
  0x1d   : > { %p341_p1 = pnand %p340_p0, %p334_p7 }
  0x1f   : > { %344 = shalt.err (!%p341_p1)
}
  0x20   : > { %s345_s17 = scalar_lea.vmem %s516_s30, 128  ;;  %s428_s19 = smov [#allocation2]  }
  0x21   : > { %p346_p2 = scmp.ne.s32.totalorder %s516_s30, %s345_s17  ;;  %s350_s23 = sshll.u32 %s428_s19, 4  ;;  %s351_s23 = int_to_ptr.vmem [resolvable:$false] %s350_s23 }
  0x22   : > { %s352_s24 = scalar_lea.vmem %s351_s23, 256  ;;  %p353_p11 = scmp.lt.s32.totalorder %s516_s30, %s351_s23 }
  0x23   : > { %p348_p4 = pnand %p346_p2, %p332_p3  ;;  %p354_p5 = scmp.lt.s32.totalorder %s352_s24, %s345_s17 }
  0x25   : > { %p349_p12 = pneg %p348_p4  ;;  %p355_p8 = por %p354_p5, %p353_p11 }
  0x27   : > { %p356_p9 = pnand %p355_p8, %p349_p12 }
  0x29   : > { %359 = shalt.err (!%p356_p9)
}
  0x2a   : > { %289 = dma.hbm_to_vmem [thread:$0]  (!%p512_p13), %s508_s28, 128, %s516_s30, %s113_s4  }
  0x2b   : > { %p621_p0 = scmp.lt.s32.totalorder %s426_s12, 3  ;;  %p622_p1 = scmp.ge.s32.totalorder %s426_s12, 1 }
  0x2d   : > { %p129_p3 = pnand %p622_p1, %p621_p0 }
  0x2e   : > { %s550_s25 = sand.u32 (!%p129_p3), 1, %s418_s10  }
  0x2f   : > { %132 = sbr.rel (%p129_p3) target bundleno = 383 (0x17f), region = 28  ;;  %s276_s26 = sshll.u32 (!%p129_p3), %s550_s25, 3 }
  0x30   : > { %s135_s27 = scalar_lea.sflag (!%p129_p3), [#allocation3], %s550_s25  ;;  %s138_s29 = scalar_lea.vmem (!%p129_p3), [#allocation2], %s276_s26 }
  0x36   : > { %405 = dma.done.wait (%p488_p6), %s135_s27, 128  }
  0x37   : > { %407 = vsyncadd (%p488_p6), %s135_s27, 4294967168  ;;  %vm160_vm0 = vcmask 261120   ;;  %v159_v0 = vld [vmem:[%s138_s29] sm:$0xff]  ;;  %v175_v9 = vlaneseq  ;;  %s279_s30 = sshll.u32 %s466_s13, 7  ;;  %s158_s3 = scalar_lea.vmem [#allocation5], %s276_s26 }
  0x38   : > { %v161_v1 = vsel %vm160_vm0, %v159_v0, 0.0  ;;  %v174_v13 = vld [vmem:[%s613_s1] sm:$0x3]  ;;  %s200_s4 = sshll.u32 %s158_s3, 4  ;;  %s567_s7 = scalar_lea.hbm %s614_s2, %s279_s30  ;;  %s569_s4 = int_to_ptr.vmem [resolvable:$true] %s200_s4 }
  0x39   : > { %162 = vadd.xlane.f32.xlu0 %v161_v1  ;;  %v176_v11 = vshrl.u32 %v175_v9, 7  ;;  %s187_s8 = scalar_lea.sflag [#allocation4], %s550_s25  ;;  %s360_s14 = scalar_lea.vmem %s569_s4, 128 }
  0x3a   : > { %p361_p6 = scmp.ne.s32.totalorder %s569_s4, %s360_s14  ;;  %p623_p11 = scmp.ne.s32.totalorder %s618_s21, 0 }
  0x3b   : > { %v177_v12 = vsub.s32 0, %v176_v11  ;;  %v182_v14 = vsub.s32 1, %v176_v11  ;;  %s429_s13 = smov [#allocation5]  }
  0x3c   : > { %p362_p12 = pnand %p361_p6, %p623_p11  ;;  %s364_s16 = sshll.u32 %s429_s13, 4  ;;  %s365_s16 = int_to_ptr.vmem [resolvable:$false] %s364_s16 }
  0x3d   : > { %v178_v15 = vrot.slane %v174_v13, %v177_v12  ;;  %v183_v18 = vrot.slane %v174_v13, %v182_v14  ;;  %s366_s17 = scalar_lea.vmem %s365_s16, 256  ;;  %p367_p7 = scmp.lt.s32.totalorder %s569_s4, %s365_s16 }
  0x3e   : > { %p363_p13 = pneg %p362_p12  ;;  %p368_p10 = scmp.lt.s32.totalorder %s366_s17, %s360_s14 }
  0x40   : > { %p369_p2 = por %p368_p10, %p367_p7 }
  0x42   : > { %p370_p4 = pnand %p369_p2, %p363_p13 }
  0xc6   : > { %v163_v2 = vpop.xlane.xlu0 %162 }
  0xc7   : > { %v164_v3 = vmul.f32 0.03125, %v163_v2 }
  0xc9   : > { %v165_v4 = vsub.f32 %v159_v0, %v164_v3 }
  0xcb   : > { %v166_v5 = vmul.f32 %v165_v4, %v165_v4 }
  0xcd   : > { %v167_v6 = vsel %vm160_vm0, %v166_v5, 0.0 }
  0xce   : > { %168 = vadd.xlane.f32.xlu0 %v167_v6 }
 0x15b   : > { %v169_v7 = vpop.xlane.xlu0 %168 }
 0x15c   : > { %v170_v8 = vmul.f32 0.03125, %v169_v7 }
 0x15e   : > { %v171_v10 = vadd.f32 1e-05, %v170_v8 }
 0x160   : > { %328 = vrsqrt.f32 %v171_v10 }
 0x16a   : > { %v329_v16 = vpop.eup %328 }
 0x16b   : > { %v173_v17 = vmul.f32 %v329_v16, %v165_v4 }
 0x16d   : > { %v179_v19 = vmul.f32 %v178_v15, %v173_v17 }
 0x16f   : > { %v184_v20 = vadd.f32 %v183_v18, %v179_v19 }
 0x171   : > { %185 = vst.msk [vmem:[%s158_s3] sm:$0xff] %vm160_vm0, %v184_v20 }
 0x172   : > { %373 = shalt.err (!%p370_p4)
}
 0x173   : > { %s374_s19 = scalar_lea.hbm %s567_s7, 128  ;;  %s378_s25 = scalar_lea.hbm %s614_s2, 256 }
 0x174   : > { %p375_p5 = scmp.ne.s32.totalorder %s567_s7, %s374_s19  ;;  %p379_p0 = scmp.lt.u32.totalorder %s567_s7, %s614_s2 }
 0x175   : > { %p380_p1 = scmp.lt.u32.totalorder %s378_s25, %s374_s19  ;;  %p382_p6 = scmp.lt.u32.totalorder %s374_s19, %s567_s7 }
 0x176   : > { %p376_p8 = pnand %p375_p5, %p623_p11 }
 0x177   : > { %p381_p3 = por %p380_p1, %p379_p0 }
 0x178   : > { %p377_p9 = pneg %p376_p8 }
 0x179   : > { %p383_p12 = por %p382_p6, %p381_p3 }
 0x17b   : > { %p384_p13 = pnand %p383_p12, %p377_p9 }
 0x17d   : > { %387 = shalt.err (!%p384_p13)
}
 0x17e   : > { %284 = dma.vmem_to_hbm [thread:$0]  (%p623_p11), %s569_s4, 128, %s567_s7, %s187_s8  }
 0x17f PF: > { %s212_s29 = sand.u32 1, %s414_s9   ;;  %p624_p7 = scmp.ne.s32.totalorder %s619_s22, 0 }
 0x180   : > { %p625_p10 = scmp.ge.s32.totalorder %s426_s12, 2  ;;  %s213_s20 = scalar_lea.sflag [#allocation4], %s212_s29 }
 0x182   : > { %p291_p2 = pnand %p625_p10, %p624_p7 }
 0x184   : > { %409 = dma.done.wait (!%p291_p2), %s213_s20, 128  }
 0x185   : > { %411 = vsyncadd (!%p291_p2), %s213_s20, 4294967168  ;;  %p15_p4 = scmp.ge.s32.totalorder %s470_s15, 4   ;;  %s626_s9 = smov %s418_s10 }
 0x186   : > { %s627_s10 = smov %s422_s11  ;;  %s628_s11 = smov %s482_s18 }
 0x187   : > { %s629_s12 = smov %s470_s15  ;;  %17 = sbr.rel (!%p15_p4) target bundleno = 5 (0x5), region = 73 }
 0x18e   :  { %218 = vsyncpa [#allocation3], 1 }
 0x18f   :  { %220 = vsyncpa [#allocation3 + $0x1], 1 }
 0x190   :  { %221 = vsyncpa [#allocation4], 1 }
 0x191   :  { %223 = vsyncpa [#allocation4 + $0x1], 1 }

</bundles_post_ra>
